<compile_context>
chip_gen: v6e
topology: v6e:2x2x1
jax: 0.10.0
libtpu: 0.0.40
codegen_flags: <defaults>
</compile_context>

<pallas_src>
import functools

import jax
import jax.numpy as jnp
from jax import lax
from jax.experimental import pallas as pl
from jax.experimental.pallas import tpu as pltpu


def _circle_loss_kernel(lab_row_ref, lab_col_ref, x_ref, out_ref,
                        *, m, gamma, tile_b):
    i = pl.program_id(0)
    num_b = x_ref.shape[0]
    tb = tile_b

    # ---- L2-normalize keys (full batch) and the query tile.
    # F.normalize(p=2, dim=1, eps=1e-12) == x * rsqrt(max(||x||^2, eps^2));
    # rsqrt goes to the EUP (one op instead of sqrt + divide).
    xk = x_ref[...].astype(jnp.float32)                                   # (B, D)
    xk = xk * lax.rsqrt(jnp.maximum(jnp.sum(xk * xk, axis=1, keepdims=True),
                                    1e-24))

    q0 = pl.multiple_of(i * tb, tb)
    xq = x_ref[pl.ds(q0, tb), :].astype(jnp.float32)                      # (TB, D)
    xq = xq * lax.rsqrt(jnp.maximum(jnp.sum(xq * xq, axis=1, keepdims=True),
                                    1e-24))

    # ---- cosine similarities on the MXU: (TB, D) x (B, D)^T -> (TB, B)
    sim = lax.dot_general(xq, xk, (((1,), (1,)), ((), ())),
                          preferred_element_type=jnp.float32)

    # ---- pair masks from integer labels; one (TB, B) iota for the diagonal.
    lab_r = lab_row_ref[...]                                              # (1, B)
    lab_q = lab_col_ref[pl.ds(q0, tb), :]                                 # (TB, 1)
    same = lab_q == lab_r                                                 # (TB, B)
    col_ids = lax.broadcasted_iota(jnp.int32, (tb, num_b), 1)             # (TB, B)
    row_ids = lax.broadcasted_iota(jnp.int32, (tb, 1), 0) + q0            # (TB, 1)
    pos_mask = jnp.logical_and(same, col_ids != row_ids)                  # same, i != j
    neg_mask = jnp.logical_not(same)                                      # diff label

    # ---- Circle-loss logits
    logit_p = (-gamma) * jnp.maximum((1.0 + m) - sim, 0.0) * (sim - (1.0 - m))
    logit_n = gamma * jnp.maximum(sim + m, 0.0) * (sim - m)

    # ---- masked, numerically stable logsumexp over the pair axis (axis=1).
    # Masked entries carry -1e30: whenever a row has any unmasked entry
    # (|logit| <= ~4*gamma), (v - max) <= -1e29 so exp underflows to exactly 0
    # — no mask-multiply / pair-count reductions needed.
    neg_big = jnp.float32(-1e30)
    mp = jnp.where(pos_mask, logit_p, neg_big)
    mn = jnp.where(neg_mask, logit_n, neg_big)
    max_p = jnp.max(mp, axis=1, keepdims=True)
    max_n = jnp.max(mn, axis=1, keepdims=True)
    sum_p = jnp.sum(jnp.exp(mp - max_p), axis=1, keepdims=True)
    sum_n = jnp.sum(jnp.exp(mn - max_n), axis=1, keepdims=True)
    has_p = max_p > jnp.float32(-1e29)
    has_n = max_n > jnp.float32(-1e29)
    lse_p = jnp.where(has_p, max_p + jnp.log(sum_p), 0.0)
    lse_n = jnp.where(has_n, max_n + jnp.log(sum_n), 0.0)

    # softplus(lse_p + lse_n), stable form; zero rows without pos or neg pairs.
    z = lse_p + lse_n
    row_loss = jnp.maximum(z, 0.0) + jnp.log(1.0 + jnp.exp(-jnp.abs(z)))
    valid = jnp.logical_and(has_p, has_n)
    out_ref[...] = jnp.where(valid, row_loss, 0.0)                        # (TB, 1)


def circle_loss(embeddings, labels, *, m=0.4, gamma=80.0, tile_b=None):
    """CircleLoss forward. embeddings: (B, D) f32, labels: (B,) int."""
    B, D = embeddings.shape
    if tile_b is None:
        if B <= 512:
            tile_b = B            # single grid step — no pipeline overhead
        else:
            tile_b = next(t for t in (256, 128, 64, 32, 16, 8) if B % t == 0)
    tile_b = min(tile_b, B)
    assert B % tile_b == 0, "batch must be a multiple of the query tile"

    lab = labels.astype(jnp.int32)
    lab_row = lab.reshape(1, B)   # lane-oriented labels (key side)
    lab_col = lab.reshape(B, 1)   # sublane-oriented labels (query side)

    kernel = functools.partial(_circle_loss_kernel, m=float(m),
                               gamma=float(gamma), tile_b=tile_b)
    per_anchor = pl.pallas_call(
        kernel,
        out_shape=jax.ShapeDtypeStruct((B, 1), jnp.float32),
        grid_spec=pltpu.PrefetchScalarGridSpec(
            num_scalar_prefetch=0,
            grid=(B // tile_b,),
            in_specs=[
                pl.BlockSpec((1, B), lambda i: (0, 0)),   # labels (1, B)
                pl.BlockSpec((B, 1), lambda i: (0, 0)),   # labels (B, 1)
                pl.BlockSpec((B, D), lambda i: (0, 0)),   # embeddings, resident
            ],
            out_specs=pl.BlockSpec((tile_b, 1), lambda i: (i, 0)),
        ),
        compiler_params=pltpu.CompilerParams(
            dimension_semantics=("parallel",),
            vmem_limit_bytes=48 << 20),
    )(lab_row, lab_col, embeddings.astype(jnp.float32))

    # AvgNonZeroReducer: mean over strictly positive per-anchor losses.
    row = per_anchor[:, 0]
    nz = jnp.sum((row > 0.0).astype(jnp.float32))
    return jnp.where(nz > 0.0,
                     jnp.sum(row) / jnp.maximum(nz, 1.0),
                     jnp.zeros((), jnp.float32))


def _circle_loss_ref(x, labels, m, gamma):
    """Pure-JAX reference (same math as pytorch-metric-learning CircleLoss fwd)."""
    x = x.astype(jnp.float32)
    xn = x / jnp.maximum(jnp.linalg.norm(x, axis=1, keepdims=True), 1e-12)
    sim = jnp.dot(xn, xn.T, precision=jax.lax.Precision.HIGHEST)
    B = x.shape[0]
    same = labels[:, None] == labels[None, :]
    eye = jnp.eye(B, dtype=bool)
    pos_mask = same & (~eye)
    neg_mask = ~same
    logit_p = -gamma * jnp.maximum((1.0 + m) - sim, 0.0) * (sim - (1.0 - m))
    logit_n = gamma * jnp.maximum(sim + m, 0.0) * (sim - m)
    neg_big = jnp.float32(-1e30)

    def masked_lse(v, mask):
        mv = jnp.where(mask, v, neg_big)
        mx = jnp.max(mv, axis=1, keepdims=True)
        s = jnp.sum(mask.astype(jnp.float32) * jnp.exp(mv - mx),
                    axis=1, keepdims=True)
        has = jnp.any(mask, axis=1, keepdims=True)
        return jnp.where(has, mx + jnp.log(s), 0.0), has

    lse_p, has_p = masked_lse(logit_p, pos_mask)
    lse_n, has_n = masked_lse(logit_n, neg_mask)
    z = lse_p + lse_n
    sp = jnp.maximum(z, 0.0) + jnp.log(1.0 + jnp.exp(-jnp.abs(z)))
    valid = (has_p & has_n).astype(jnp.float32)
    row_loss = (sp * valid)[:, 0]
    nz = jnp.sum((row_loss > 0.0).astype(jnp.float32))
    return jnp.where(nz > 0.0, jnp.sum(row_loss) / jnp.maximum(nz, 1.0), 0.0)


if __name__ == "__main__":
    # Module config: CircleLoss(m=0.4, gamma=80) over (B, D) embeddings + labels.
    B, D, n_classes = 16, 32, 4
    m, gamma = 0.4, 80.0

    key = jax.random.PRNGKey(0)
    k_x, k_y = jax.random.split(key)
    embeddings = jax.random.normal(k_x, (B, D), dtype=jnp.float32)
    labels = jax.random.randint(k_y, (B,), 0, n_classes, dtype=jnp.int32)

    loss = circle_loss(embeddings, labels, m=m, gamma=gamma)
    jax.block_until_ready(loss)

    ref = _circle_loss_ref(embeddings, labels, m, gamma)
    # gamma=80 amplifies any matmul-precision difference between the MXU path
    # and the XLA reference inside the logits, so compare at a modest tolerance.
    assert jnp.allclose(loss, ref, rtol=2e-2, atol=1e-2), (float(loss), float(ref))
    print("KERNEL_OK")
</pallas_src>

<mosaic_0001>
module attributes {stable_mosaic.version = 11 : i64} {
  func.func @_circle_loss_kernel(%arg0: i32, %arg1: memref<1x16xi32, #tpu.memory_space<vmem>>, %arg2: memref<16x1xi32, #tpu.memory_space<vmem>>, %arg3: memref<16x32xf32, #tpu.memory_space<vmem>>, %arg4: memref<16x1xf32, #tpu.memory_space<vmem>>) attributes {dimension_semantics = [#tpu.dimension_semantics<parallel>], iteration_bounds = array<i64: 1>, scalar_prefetch = 0 : i64, scratch_operands = 0 : i64, tpu.core_type = #tpu.core_type<tc>, window_params = [{pipeline_mode = #tpu.pipeline_mode<synchronous>, transform_indices = @transform_0, window_bounds = array<i64: 1, 16>}, {pipeline_mode = #tpu.pipeline_mode<synchronous>, transform_indices = @transform_1, window_bounds = array<i64: 16, 1>}, {pipeline_mode = #tpu.pipeline_mode<synchronous>, transform_indices = @transform_2, window_bounds = array<i64: 16, 32>}, {transform_indices = @transform_3, window_bounds = array<i64: 16, 1>}]} {
    %c0 = arith.constant 0 : index
    %c0_0 = arith.constant 0 : index
    %0 = vector.load %arg3[%c0, %c0_0] : memref<16x32xf32, #tpu.memory_space<vmem>>, vector<16x32xf32>
    %1 = arith.mulf %0, %0 : vector<16x32xf32>
    %cst = arith.constant dense<0.000000e+00> : vector<16xf32>
    %2 = vector.multi_reduction <add>, %1, %cst [1] : vector<16x32xf32> to vector<16xf32>
    %3 = vector.shape_cast %2 : vector<16xf32> to vector<16x1xf32>
    %cst_1 = arith.constant 1.000000e-24 : f32
    %4 = vector.broadcast %cst_1 : f32 to vector<16x1xf32>
    %5 = arith.maximumf %3, %4 : vector<16x1xf32>
    %6 = math.rsqrt %5 : vector<16x1xf32>
    %7 = vector.broadcast %6 : vector<16x1xf32> to vector<16x32xf32>
    %8 = arith.mulf %0, %7 : vector<16x32xf32>
    %c16_i32 = arith.constant 16 : i32
    %9 = arith.muli %arg0, %c16_i32 : i32
    %10 = tpu.assume_multiple %9, 16 : i32
    %11 = arith.index_cast %10 : i32 to index
    %c0_2 = arith.constant 0 : index
    %12 = vector.load %arg3[%11, %c0_2] : memref<16x32xf32, #tpu.memory_space<vmem>>, vector<16x32xf32>
    %13 = arith.mulf %12, %12 : vector<16x32xf32>
    %cst_3 = arith.constant dense<0.000000e+00> : vector<16xf32>
    %14 = vector.multi_reduction <add>, %13, %cst_3 [1] : vector<16x32xf32> to vector<16xf32>
    %15 = vector.shape_cast %14 : vector<16xf32> to vector<16x1xf32>
    %cst_4 = arith.constant 1.000000e-24 : f32
    %16 = vector.broadcast %cst_4 : f32 to vector<16x1xf32>
    %17 = arith.maximumf %15, %16 : vector<16x1xf32>
    %18 = math.rsqrt %17 : vector<16x1xf32>
    %19 = vector.broadcast %18 : vector<16x1xf32> to vector<16x32xf32>
    %20 = arith.mulf %12, %19 : vector<16x32xf32>
    %cst_5 = arith.constant dense<0.000000e+00> : vector<16x16xf32>
    %21 = tpu.matmul %20, %8, %cst_5 {dimension_numbers = #tpu.dot_dimension_numbers<[1], [1], [0], [0], [0, 0, 1, 0], [], []>} : vector<16x32xf32>, vector<16x32xf32>, vector<16x16xf32> -> vector<16x16xf32>
    %c0_6 = arith.constant 0 : index
    %c0_7 = arith.constant 0 : index
    %22 = vector.load %arg1[%c0_6, %c0_7] : memref<1x16xi32, #tpu.memory_space<vmem>>, vector<1x16xi32>
    %23 = arith.index_cast %10 : i32 to index
    %c0_8 = arith.constant 0 : index
    %24 = vector.load %arg2[%23, %c0_8] : memref<16x1xi32, #tpu.memory_space<vmem>>, vector<16x1xi32>
    %25 = vector.broadcast %24 : vector<16x1xi32> to vector<16x16xi32>
    %26 = vector.broadcast %22 : vector<1x16xi32> to vector<16x16xi32>
    %27 = arith.cmpi eq, %25, %26 : vector<16x16xi32>
    %28 = tpu.iota {dimensions = array<i32: 1>} : vector<16x16xi32>
    %29 = tpu.iota {dimensions = array<i32: 0>} : vector<16x1xi32>
    %30 = vector.broadcast %10 : i32 to vector<16x1xi32>
    %31 = arith.addi %29, %30 : vector<16x1xi32>
    %32 = vector.broadcast %31 : vector<16x1xi32> to vector<16x16xi32>
    %33 = arith.cmpi ne, %28, %32 : vector<16x16xi32>
    %34 = arith.andi %27, %33 : vector<16x16xi1>
    %cst_9 = arith.constant dense<true> : vector<16x16xi1>
    %35 = arith.xori %27, %cst_9 : vector<16x16xi1>
    %cst_10 = arith.constant 1.400000e+00 : f32
    %36 = vector.broadcast %cst_10 : f32 to vector<16x16xf32>
    %37 = arith.subf %36, %21 : vector<16x16xf32>
    %cst_11 = arith.constant 0.000000e+00 : f32
    %38 = vector.broadcast %cst_11 : f32 to vector<16x16xf32>
    %39 = arith.maximumf %37, %38 : vector<16x16xf32>
    %cst_12 = arith.constant -8.000000e+01 : f32
    %40 = vector.broadcast %cst_12 : f32 to vector<16x16xf32>
    %41 = arith.mulf %40, %39 : vector<16x16xf32>
    %cst_13 = arith.constant 6.000000e-01 : f32
    %42 = vector.broadcast %cst_13 : f32 to vector<16x16xf32>
    %43 = arith.subf %21, %42 : vector<16x16xf32>
    %44 = arith.mulf %41, %43 : vector<16x16xf32>
    %cst_14 = arith.constant 4.000000e-01 : f32
    %45 = vector.broadcast %cst_14 : f32 to vector<16x16xf32>
    %46 = arith.addf %21, %45 : vector<16x16xf32>
    %cst_15 = arith.constant 0.000000e+00 : f32
    %47 = vector.broadcast %cst_15 : f32 to vector<16x16xf32>
    %48 = arith.maximumf %46, %47 : vector<16x16xf32>
    %cst_16 = arith.constant 8.000000e+01 : f32
    %49 = vector.broadcast %cst_16 : f32 to vector<16x16xf32>
    %50 = arith.mulf %49, %48 : vector<16x16xf32>
    %cst_17 = arith.constant 4.000000e-01 : f32
    %51 = vector.broadcast %cst_17 : f32 to vector<16x16xf32>
    %52 = arith.subf %21, %51 : vector<16x16xf32>
    %53 = arith.mulf %50, %52 : vector<16x16xf32>
    %cst_18 = arith.constant -1.000000e+30 : f32
    %54 = vector.broadcast %cst_18 : f32 to vector<16x16xf32>
    %55 = arith.select %34, %44, %54 : vector<16x16xi1>, vector<16x16xf32>
    %cst_19 = arith.constant -1.000000e+30 : f32
    %56 = vector.broadcast %cst_19 : f32 to vector<16x16xf32>
    %57 = arith.select %35, %53, %56 : vector<16x16xi1>, vector<16x16xf32>
    %cst_20 = arith.constant dense<0xFF800000> : vector<16xf32>
    %58 = vector.multi_reduction <maximumf>, %55, %cst_20 [1] : vector<16x16xf32> to vector<16xf32>
    %59 = vector.shape_cast %58 : vector<16xf32> to vector<16x1xf32>
    %cst_21 = arith.constant dense<0xFF800000> : vector<16xf32>
    %60 = vector.multi_reduction <maximumf>, %57, %cst_21 [1] : vector<16x16xf32> to vector<16xf32>
    %61 = vector.shape_cast %60 : vector<16xf32> to vector<16x1xf32>
    %62 = vector.broadcast %59 : vector<16x1xf32> to vector<16x16xf32>
    %63 = arith.subf %55, %62 : vector<16x16xf32>
    %64 = math.exp %63 : vector<16x16xf32>
    %cst_22 = arith.constant dense<0.000000e+00> : vector<16xf32>
    %65 = vector.multi_reduction <add>, %64, %cst_22 [1] : vector<16x16xf32> to vector<16xf32>
    %66 = vector.shape_cast %65 : vector<16xf32> to vector<16x1xf32>
    %67 = vector.broadcast %61 : vector<16x1xf32> to vector<16x16xf32>
    %68 = arith.subf %57, %67 : vector<16x16xf32>
    %69 = math.exp %68 : vector<16x16xf32>
    %cst_23 = arith.constant dense<0.000000e+00> : vector<16xf32>
    %70 = vector.multi_reduction <add>, %69, %cst_23 [1] : vector<16x16xf32> to vector<16xf32>
    %71 = vector.shape_cast %70 : vector<16xf32> to vector<16x1xf32>
    %cst_24 = arith.constant -1.000000e+29 : f32
    %72 = vector.broadcast %cst_24 : f32 to vector<16x1xf32>
    %73 = arith.cmpf ogt, %59, %72 : vector<16x1xf32>
    %cst_25 = arith.constant -1.000000e+29 : f32
    %74 = vector.broadcast %cst_25 : f32 to vector<16x1xf32>
    %75 = arith.cmpf ogt, %61, %74 : vector<16x1xf32>
    %76 = math.log %66 : vector<16x1xf32>
    %77 = arith.addf %59, %76 : vector<16x1xf32>
    %cst_26 = arith.constant 0.000000e+00 : f32
    %78 = vector.broadcast %cst_26 : f32 to vector<16x1xf32>
    %79 = arith.select %73, %77, %78 : vector<16x1xi1>, vector<16x1xf32>
    %80 = math.log %71 : vector<16x1xf32>
    %81 = arith.addf %61, %80 : vector<16x1xf32>
    %cst_27 = arith.constant 0.000000e+00 : f32
    %82 = vector.broadcast %cst_27 : f32 to vector<16x1xf32>
    %83 = arith.select %75, %81, %82 : vector<16x1xi1>, vector<16x1xf32>
    %84 = arith.addf %79, %83 : vector<16x1xf32>
    %cst_28 = arith.constant 0.000000e+00 : f32
    %85 = vector.broadcast %cst_28 : f32 to vector<16x1xf32>
    %86 = arith.maximumf %84, %85 : vector<16x1xf32>
    %87 = math.absf %84 : vector<16x1xf32>
    %cst_29 = arith.constant 0.000000e+00 : f32
    %88 = vector.broadcast %cst_29 : f32 to vector<16x1xf32>
    %89 = arith.subf %88, %87 : vector<16x1xf32>
    %90 = math.exp %89 : vector<16x1xf32>
    %cst_30 = arith.constant 1.000000e+00 : f32
    %91 = vector.broadcast %cst_30 : f32 to vector<16x1xf32>
    %92 = arith.addf %91, %90 : vector<16x1xf32>
    %93 = math.log %92 : vector<16x1xf32>
    %94 = arith.addf %86, %93 : vector<16x1xf32>
    %95 = arith.andi %73, %75 : vector<16x1xi1>
    %cst_31 = arith.constant 0.000000e+00 : f32
    %96 = vector.broadcast %cst_31 : f32 to vector<16x1xf32>
    %97 = arith.select %95, %94, %96 : vector<16x1xi1>, vector<16x1xf32>
    %c0_32 = arith.constant 0 : index
    %c0_33 = arith.constant 0 : index
    %98 = vector.load %arg4[%c0_32, %c0_33] : memref<16x1xf32, #tpu.memory_space<vmem>>, vector<16x1xf32>
    tpu.vector_store %arg4[%c0_32, %c0_33], %97 {strides = array<i32>} : memref<16x1xf32, #tpu.memory_space<vmem>>, vector<16x1xf32>,
    return
  }
  func.func @transform_0(%arg0: i32) -> (i32, i32) {
    %c0_i32 = arith.constant 0 : i32
    %c0_i32_0 = arith.constant 0 : i32
    %c0_i32_1 = arith.constant 0 : i32
    return %c0_i32, %c0_i32_0 : i32, i32
  }
  func.func @transform_1(%arg0: i32) -> (i32, i32) {
    %c0_i32 = arith.constant 0 : i32
    %c0_i32_0 = arith.constant 0 : i32
    %c0_i32_1 = arith.constant 0 : i32
    return %c0_i32, %c0_i32_0 : i32, i32
  }
  func.func @transform_2(%arg0: i32) -> (i32, i32) {
    %c0_i32 = arith.constant 0 : i32
    %c0_i32_0 = arith.constant 0 : i32
    %c0_i32_1 = arith.constant 0 : i32
    return %c0_i32, %c0_i32_0 : i32, i32
  }
  func.func @transform_3(%arg0: i32) -> (i32, i32) {
    %c0_i32 = arith.constant 0 : i32
    %c0_i32_0 = arith.constant 0 : i32
    return %arg0, %c0_i32 : i32, i32
  }
}

</mosaic_0001>

<bundles_post_ra>
// kernel: tpu_custom_call.1
= control target key start
LH: loop header
LB: loop body
LE: loop exit
PB: predicated region body
PF: predicated region fallthrough
CT: control target
= control target key end

     0   :  { %vm18_vm0 = vcmask 261120   ;;  %v334_v6 = vmov 0   ;;  %v152_v25 = vlaneseq  ;;  %vm190_vm7 = vcmask 130048   ;;  %s433_s2 = inlined_call_operand.vmem [shape: f32[16,32], index: 2, kind: input, shape index: {}]   ;;  %s434_s1 = inlined_call_operand.vmem [shape: s32[16,1], index: 1, kind: input, shape index: {}]   ;;  %s435_s0 = inlined_call_operand.vmem [shape: s32[1,16], index: 0, kind: input, shape index: {}]   ;;  %s436_s3 = inlined_call_operand.vmem [shape: f32[16,1], index: 3, kind: output, shape index: {}]  }
   0x1   :  { %v15_v0 = vld [vmem:[%s433_s2 + $0x8] sm:$0xff]  ;;  %v33_v1 = vld [vmem:[%s433_s2] sm:$0xff]  ;;  %301 = vset.pattern.permute.xlu1 %v334_v6  ;;  %300 = vset.pattern.permute.xlu0 %v334_v6  ;;  %vm335_vm8 = vmmov 1   ;;  %vm271_vm15 = vcmask 7168  }
   0x2   :  { %v17_v2 = vmul.f32 %v15_v0, %v15_v0  ;;  %v35_v3 = vmul.f32 %v33_v1, %v33_v1  ;;  %v139_v7 = vld [vmem:[%s434_s1 + $0x8] sm:$0xff]  ;;  %v138_v8 = vld [vmem:[%s434_s1] sm:$0xff]  ;;  %v155_v26 = vshrl.u32 %v152_v25, 7  ;;  %v153_v28 = vand.u32 127, %v152_v25 }
   0x3   :  { %v282_v33 = vld [vmem:[%s435_s0] ss:$0 sm:$0xff] }
   0x4   :  { %v22_v4 = vsel %vm18_vm0, %v17_v2, 0.0  ;;  %v37_v5 = vsel %vm18_vm0, %v35_v3, 0.0  ;;  %v156_v29 = vadd.s32 8, %v155_v26  ;;  %vm160_vm3 = vcmp.ne.s32.totalorder %v153_v28, %v155_v26 }
   0x5   :  { %23 = vadd.xlane.f32.xlu0 %v22_v4  ;;  %38 = vadd.xlane.f32.xlu1 %v37_v5 }
   0x6   :  { %vm161_vm1 = vcmp.ne.s32.totalorder %v153_v28, %v156_v29 }
   0x9   :  { %20 = vadd.xlane.f32.xlu0 %v37_v5  ;;  %41 = vadd.xlane.f32.xlu1 %v22_v4 }
  0x1a   :  { %144 = vperm.xlu1 %301, %v139_v7  }
  0x1f   :  { %141 = vperm.xlu0 %300, %v138_v8  }
  0x8e   :  { %v24_v9 = vpop.xlane.xlu0 %23  ;;  %v39_v10 = vpop.xlane.xlu1 %38 }
  0x8f   :  { %v26_v11 = vmax.f32 %v24_v9, 1e-24  ;;  %v43_v12 = vmax.f32 %v39_v10, 1e-24 }
  0x91   :  { %302 = vrsqrt.f32 %v26_v11 }
  0x92   :  { %304 = vrsqrt.f32 %v43_v12  ;;  %v21_v13 = vpop.xlane.xlu0 %20  ;;  %v42_v14 = vpop.xlane.xlu1 %41 }
  0x93   :  { %v25_v15 = vmax.f32 %v21_v13, 1e-24  ;;  %v44_v16 = vmax.f32 %v42_v14, 1e-24 }
  0x95   :  { %306 = vrsqrt.f32 %v25_v15 }
  0x96   :  { %308 = vrsqrt.f32 %v44_v16  ;;  %v145_v32 = vpop.permute.xlu1 %144 }
  0x97   :  { %vm151_vm2 = vcmp.eq.s32.totalorder %v145_v32, %v282_v33 }
  0x98   :  { %vm163_vm5 = vmand %vm151_vm2, %vm161_vm1 }
  0x99   :  { %vm165_vm10 = vmxor %vm151_vm2, %vm335_vm8 }
  0x9a   :  { %v142_v35 = vpop.permute.xlu0 %141 }
  0x9b   :  { %vm150_vm4 = vcmp.eq.s32.totalorder %v142_v35, %v282_v33 }
  0x9c   :  { %vm162_vm6 = vmand %vm150_vm4, %vm160_vm3 }
  0x9d   :  { %vm164_vm9 = vmxor %vm150_vm4, %vm335_vm8 }
  0x9e   :  { %v303_v17 = vpop.eup %302 }
  0x9f   :  { %v305_v18 = vpop.eup %304  ;;  %v30_v19 = vmul.f32 %v303_v17, %v15_v0 }
  0xa0   :  { %v47_v20 = vmul.f32 %v305_v18, %v33_v1 }
  0xa1   :  { %291 = vmatprep.subr.msk.mxu0 %vm18_vm0, %v30_v19 }
  0xa2   :  { %v307_v21 = vpop.eup %306  ;;  %292 = vmatpush3.xpose.msk.msra.mxu0 %vm18_vm0, %v30_v19  ;;  %295 = vmatprep.mubr.msk.f32.mxu0 %vm18_vm0, %v47_v20 }
  0xa3   :  { %v309_v22 = vpop.eup %308  ;;  %v29_v23 = vmul.f32 %v307_v21, %v33_v1 }
  0xa4   :  { %v48_v24 = vmul.f32 %v309_v22, %v15_v0 }
  0xa5   :  { %293 = vmatprep.subr.msk.mxu0 %vm18_vm0, %v29_v23 }
  0xa6   :  { %294 = vmatpush3.xpose.msk.msra.mxu0 %vm18_vm0, %v29_v23 }
  0xa9   :  { %296 = vmatmul.mubr.msk.f32.vlgmr.msra.gmra.mxu0 %vm18_vm0, %v48_v24 }
 0x169   :  { %v297_v27 = vpop.f32.mrf.mxu0 }
 0x16a   :  { %v167_v30 = vsub.f32 1.4, %v297_v27  ;;  %v177_v31 = vadd.f32 0.4, %v297_v27  ;;  %v284_v43 = vadd.f32 -0.6, %v297_v27 }
 0x16b   :  { %v127_v34 = vpop.f32.mrf.mxu0  ;;  %v286_v55 = vadd.f32 -0.4, %v297_v27 }
 0x16c   :  { %v166_v36 = vsub.f32 1.4, %v127_v34  ;;  %v176_v37 = vadd.f32 0.4, %v127_v34  ;;  %v169_v38 = vmax.f32 %v167_v30, 0.0  ;;  %v179_v41 = vmax.f32 %v177_v31, 0.0 }
 0x16d   :  { %v283_v45 = vadd.f32 -0.6, %v127_v34  ;;  %v285_v47 = vadd.f32 -0.4, %v127_v34 }
 0x16e   :  { %v168_v39 = vmax.f32 %v166_v36, 0.0  ;;  %v178_v40 = vmax.f32 %v176_v37, 0.0  ;;  %v171_v42 = vmul.f32 -80.0, %v169_v38  ;;  %v181_v51 = vmul.f32 80.0, %v179_v41 }
 0x170   :  { %v170_v44 = vmul.f32 -80.0, %v168_v39  ;;  %v180_v46 = vmul.f32 80.0, %v178_v40  ;;  %v175_v48 = vmul.f32 %v284_v43, %v171_v42  ;;  %v185_v58 = vmul.f32 %v286_v55, %v181_v51 }
 0x172   :  { %v174_v49 = vmul.f32 %v283_v45, %v170_v44  ;;  %v184_v50 = vmul.f32 %v285_v47, %v180_v46  ;;  %v187_v52 = vsel %vm163_vm5, %v175_v48, -1e+30  ;;  %v189_v60 = vsel %vm165_vm10, %v185_v58, -1e+30 }
 0x173   :  { %v194_v53 = vsel %vm190_vm7, %v187_v52, -inf  ;;  %v200_v61 = vsel %vm190_vm7, %v189_v60, -inf }
 0x174   :  { %v186_v54 = vsel %vm162_vm6, %v174_v49, -1e+30  ;;  %195 = vmax.xlane.f32.xlu0 %v194_v53  ;;  %v188_v57 = vsel %vm164_vm9, %v184_v50, -1e+30 }
 0x175   :  { %v191_v56 = vsel %vm190_vm7, %v186_v54, -inf  ;;  %v197_v59 = vsel %vm190_vm7, %v188_v57, -inf }
 0x176   :  { %192 = vmax.xlane.f32.xlu1 %v191_v56 }
 0x17a   :  { %198 = vmax.xlane.f32.xlu1 %v197_v59 }
 0x17e   :  { %201 = vmax.xlane.f32.xlu1 %v200_v61 }
 0x1fd   :  { %v387_v62 = vpop.xlane.xlu0 %195 }
 0x1fe   :  { %v204_v63 = vsub.f32 %v187_v52, %v387_v62  ;;  %vm228_vm13 = vcmp.gt.f32.partialorder %v387_v62, -1e+29 }
 0x1ff   :  { %v390_v0 = vpop.xlane.xlu1 %192 }
 0x200   :  { %v203_v1 = vsub.f32 %v186_v54, %v390_v0  ;;  %v207_v2 = vmul.f32 1.442695, %v204_v63  ;;  %vm227_vm11 = vcmp.gt.f32.partialorder %v390_v0, -1e+29 }
 0x202   :  { %v205_v3 = vmul.f32 1.442695, %v203_v1  ;;  %310 = vpow2.f32 %v207_v2 }
 0x203   :  { %v393_v4 = vpop.xlane.xlu1 %198 }
 0x204   :  { %v215_v5 = vsub.f32 %v188_v57, %v393_v4  ;;  %312 = vpow2.f32 %v205_v3  ;;  %vm229_vm12 = vcmp.gt.f32.partialorder %v393_v4, -1e+29 }
 0x205   :  { %vm267_vm0 = vmand %vm227_vm11, %vm229_vm12 }
 0x206   :  { %v217_v6 = vmul.f32 1.442695, %v215_v5 }
 0x207   :  { %v396_v7 = vpop.xlane.xlu1 %201 }
 0x208   :  { %v216_v8 = vsub.f32 %v189_v60, %v396_v7  ;;  %314 = vpow2.f32 %v217_v6  ;;  %vm230_vm14 = vcmp.gt.f32.partialorder %v396_v7, -1e+29 }
 0x209   :  { %vm268_vm1 = vmand %vm228_vm13, %vm230_vm14 }
 0x20a   :  { %v219_v9 = vmul.f32 1.442695, %v216_v8 }
 0x20c   :  { %316 = vpow2.f32 %v219_v9 }
 0x20f   :  { %v311_v10 = vpop.eup %310 }
 0x210   :  { %v212_v11 = vsel %vm190_vm7, %v311_v10, 0.0 }
 0x211   :  { %v313_v12 = vpop.eup %312  ;;  %213 = vadd.xlane.f32.xlu1 %v212_v11 }
 0x212   :  { %v209_v13 = vsel %vm190_vm7, %v313_v12, 0.0 }
 0x215   :  { %v315_v14 = vpop.eup %314  ;;  %210 = vadd.xlane.f32.xlu1 %v209_v13 }
 0x216   :  { %v221_v15 = vsel %vm190_vm7, %v315_v14, 0.0 }
 0x219   :  { %v317_v16 = vpop.eup %316  ;;  %222 = vadd.xlane.f32.xlu1 %v221_v15 }
 0x21a   :  { %v224_v17 = vsel %vm190_vm7, %v317_v16, 0.0 }
 0x21d   :  { %225 = vadd.xlane.f32.xlu1 %v224_v17 }
 0x29a   :  { %v214_v18 = vpop.xlane.xlu1 %213 }
 0x29e   :  { %v211_v19 = vpop.xlane.xlu1 %210 }
 0x29f   :  { %318 = vlog2.f32 %v211_v19 }
 0x2a0   :  { %320 = vlog2.f32 %v214_v18 }
 0x2a2   :  { %v223_v20 = vpop.xlane.xlu1 %222 }
 0x2a3   :  { %322 = vlog2.f32 %v223_v20 }
 0x2a6   :  { %v226_v21 = vpop.xlane.xlu1 %225 }
 0x2a7   :  { %324 = vlog2.f32 %v226_v21 }
 0x2ac   :  { %v319_v22 = vpop.eup %318 }
 0x2ad   :  { %v232_v23 = vmul.f32 0.6931472, %v319_v22  ;;  %v321_v24 = vpop.eup %320 }
 0x2ae   :  { %v234_v26 = vmul.f32 0.6931472, %v321_v24 }
 0x2af   :  { %v235_v27 = vadd.f32 %v232_v23, %v390_v0 }
 0x2b0   :  { %v323_v25 = vpop.eup %322  ;;  %v236_v31 = vadd.f32 %v234_v26, %v387_v62 }
 0x2b1   :  { %v240_v28 = vmul.f32 0.6931472, %v323_v25  ;;  %v237_v32 = vsel %vm227_vm11, %v235_v27, 0.0 }
 0x2b2   :  { %v238_v38 = vsel %vm228_vm13, %v236_v31, 0.0 }
 0x2b3   :  { %v243_v29 = vadd.f32 %v240_v28, %v393_v4 }
 0x2b4   :  { %v325_v30 = vpop.eup %324 }
 0x2b5   :  { %v245_v33 = vsel %vm229_vm12, %v243_v29, 0.0  ;;  %v242_v34 = vmul.f32 0.6931472, %v325_v30 }
 0x2b6   :  { %v247_v35 = vadd.f32 %v245_v33, %v237_v32 }
 0x2b7   :  { %v244_v36 = vadd.f32 %v242_v34, %v396_v7 }
 0x2b8   :  { %v251_v37 = vand.u32 2147483647, %v247_v35  ;;  %v249_v51 = vmax.f32 %v247_v35, 0.0 }
 0x2b9   :  { %v246_v39 = vsel %vm230_vm14, %v244_v36, 0.0 }
 0x2ba   :  { %v253_v40 = vsub.f32 0.0, %v251_v37  ;;  %v248_v41 = vadd.f32 %v246_v39, %v238_v38 }
 0x2bc   :  { %v255_v42 = vmul.f32 1.442695, %v253_v40  ;;  %v252_v43 = vand.u32 2147483647, %v248_v41  ;;  %v250_v56 = vmax.f32 %v248_v41, 0.0 }
 0x2be   :  { %326 = vpow2.f32 %v255_v42  ;;  %v254_v44 = vsub.f32 0.0, %v252_v43 }
 0x2c0   :  { %v257_v45 = vmul.f32 1.442695, %v254_v44 }
 0x2c2   :  { %328 = vpow2.f32 %v257_v45 }
 0x2cb   :  { %v327_v46 = vpop.eup %326 }
 0x2cc   :  { %v259_v47 = vadd.f32 1.0, %v327_v46 }
 0x2ce   :  { %330 = vlog2.f32 %v259_v47 }
 0x2cf   :  { %v329_v48 = vpop.eup %328 }
 0x2d0   :  { %v260_v49 = vadd.f32 1.0, %v329_v48 }
 0x2d2   :  { %332 = vlog2.f32 %v260_v49 }
 0x2db   :  { %v331_v50 = vpop.eup %330 }
 0x2dc   :  { %v262_v52 = vmul.f32 0.6931472, %v331_v50 }
 0x2de   :  { %v265_v53 = vadd.f32 %v262_v52, %v249_v51 }
 0x2df   :  { %v333_v54 = vpop.eup %332 }
 0x2e0   :  { %v269_v55 = vsel %vm267_vm0, %v265_v53, 0.0  ;;  %v264_v57 = vmul.f32 0.6931472, %v333_v54 }
 0x2e1   :  { %272 = vst.msk [vmem:[%s436_s3] sm:$0xff] %vm271_vm15, %v269_v55 }
 0x2e2   :  { %v266_v58 = vadd.f32 %v264_v57, %v250_v56 }
 0x2e4   :  { %v270_v59 = vsel %vm268_vm1, %v266_v58, 0.0 }
 0x2e5   :  { %273 = vst.msk [vmem:[%s436_s3 + $0x8] sm:$0xff] %vm271_vm15, %v270_v59 }

</bundles_post_ra>
